<compile_context>
chip_gen: v7x
topology: tpu7x:2x2x1
jax: 0.10.0
libtpu: 0.0.40
codegen_flags: <defaults>
</compile_context>

<pallas_src>
import functools

import jax
import jax.numpy as jnp
from jax import lax
from jax.experimental import pallas as pl
from jax.experimental.pallas import tpu as pltpu

NEG_SLOPE = 0.2
# TODO(synk): the Darts/DIP `act(act_fun='LeakyReLU')` helper conventionally builds
# nn.LeakyReLU(0.2); change NEG_SLOPE to 0.01 if the original uses the nn default.

LANE = 128


def _conv1x1_bn_lrelu_kernel(x_ref, w_ref, b_ref, o_ref, *, neg_slope):
    # x_ref: (block_b, C_in, hw_tile)   channels on sublanes, pixels on lanes (lane-dense)
    # w_ref: (C_out, C_in)              BN scale already folded into the weights
    # b_ref: (C_out, 1)                 conv bias + BN shift folded
    # o_ref: (block_b, C_out, hw_tile)  lane-dense output
    block_b, c_out, hw_tile = o_ref.shape
    w = w_ref[...]
    # Hoist the bias broadcast: one broadcast_in_dim per grid step, not per batch elem.
    bias = jnp.broadcast_to(b_ref[...], (c_out, hw_tile))
    for b in range(block_b):  # static; block_b == 1 for realistic (spatially tiled) shapes
        y = jnp.dot(w, x_ref[b], preferred_element_type=jnp.float32) + bias
        o_ref[b] = jnp.where(y > 0, y, neg_slope * y)  # LeakyReLU


def _choose_tiles(n, c_in, c_out, hw, *, target_bytes=1 << 20, max_hw_tile=4096):
    """Pick (block_b, hw_tile, hw_pad) so each grid step moves ~target_bytes of x+out.

    hw_tile is always a multiple of 128 lanes (unmasked vst); block_b > 1 only when a
    whole image is smaller than the byte target.  hw_pad is hw rounded up so the
    spatial grid divides exactly.
    """
    bytes_per_pixel = (c_in + c_out) * 4          # f32 read (x) + write (out) per pixel
    hw_pad_min = ((hw + LANE - 1) // LANE) * LANE

    want_lanes = max(target_bytes // (bytes_per_pixel * LANE), 1)
    hw_tile = min(hw_pad_min, max_hw_tile, want_lanes * LANE)

    if hw_tile >= hw_pad_min:
        # One spatial step covers the whole image -> fold batch elements instead.
        hw_tile = hw_pad_min
        per_image = hw_pad_min * bytes_per_pixel
        block_b = int(max(1, min(n, target_bytes // max(per_image, 1))))
        while n % block_b:                        # keep the batch grid exact
            block_b -= 1
    else:
        block_b = 1

    hw_pad = ((hw + hw_tile - 1) // hw_tile) * hw_tile
    return block_b, hw_tile, hw_pad


def down0_1_pallas(x_nchw, params, *, neg_slope=NEG_SLOPE):
    """x_nchw: (N, C_in, H, W) float32. Returns (N, C_out, H, W) float32."""
    N, C_in, H, W = x_nchw.shape
    w_f = params["w_folded"]      # (C_out, C_in)
    b_f = params["bias_folded"]   # (C_out, 1)
    C_out = w_f.shape[0]
    HW = H * W

    block_b, hw_tile, hw_pad = _choose_tiles(N, C_in, C_out, HW)

    # Free reshape (row-major, no transpose): (N, C_in, H*W).
    x_flat = x_nchw.reshape(N, C_in, HW).astype(jnp.float32)
    if hw_pad != HW:
        # One extra HBM pass only when H*W isn't already lane/tile aligned.
        x_flat = jnp.pad(x_flat, ((0, 0), (0, 0), (0, hw_pad - HW)))

    grid = (N // block_b, hw_pad // hw_tile)

    # Explicit VMEM budget: 2x double-buffered (x tile + out tile) + weights + headroom.
    tile_bytes = block_b * (C_in + C_out) * hw_tile * 4
    weight_bytes = (C_out * C_in + C_out) * 4
    vmem_limit = int(min(64 << 20, max(4 * tile_bytes + 4 * weight_bytes + (2 << 20),
                                       8 << 20)))

    kernel = functools.partial(_conv1x1_bn_lrelu_kernel, neg_slope=neg_slope)

    out_flat = pl.pallas_call(
        kernel,
        out_shape=jax.ShapeDtypeStruct((N, C_out, hw_pad), jnp.float32),
        grid_spec=pltpu.PrefetchScalarGridSpec(
            num_scalar_prefetch=0,
            grid=grid,
            in_specs=[
                pl.BlockSpec((block_b, C_in, hw_tile), lambda gb, gs: (gb, 0, gs)),
                pl.BlockSpec((C_out, C_in), lambda gb, gs: (0, 0)),
                pl.BlockSpec((C_out, 1), lambda gb, gs: (0, 0)),
            ],
            out_specs=pl.BlockSpec((block_b, C_out, hw_tile),
                                   lambda gb, gs: (gb, 0, gs)),
        ),
        compiler_params=pltpu.CompilerParams(
            # Both axes are independent tiles; spatial axis lets v7x megacore split
            # even when N == 1.
            dimension_semantics=("parallel", "parallel"),
            vmem_limit_bytes=vmem_limit),
    )(x_flat, w_f, b_f)

    if hw_pad != HW:
        out_flat = out_flat[:, :, :HW]
    return out_flat.reshape(N, C_out, H, W)


def make_params(key, in_ch, out_ch, eps=1e-5):
    """Deterministic synthetic parameters (1x1 conv + inference-mode BN), BN-folded."""
    ks = jax.random.split(key, 6)
    w = jax.random.normal(ks[0], (out_ch, in_ch, 1, 1), jnp.float32) * 0.3   # OIHW
    b = jax.random.normal(ks[1], (out_ch,), jnp.float32) * 0.1
    g = 1.0 + 0.3 * jax.random.normal(ks[2], (out_ch,), jnp.float32)
    be = 0.1 * jax.random.normal(ks[3], (out_ch,), jnp.float32)
    m = 0.1 * jax.random.normal(ks[4], (out_ch,), jnp.float32)
    v = 0.5 + jax.random.uniform(ks[5], (out_ch,), jnp.float32)

    s = g / jnp.sqrt(v + eps)                       # per-output-channel BN scale
    w_folded = w[:, :, 0, 0] * s[:, None]           # (C_out, C_in), BN scale folded in
    bias_folded = (s * (b - m) + be)[:, None]       # (C_out, 1), conv bias + BN folded

    params = {"w_folded": w_folded, "bias_folded": bias_folded}
    raw = {"w": w, "b": b, "g": g, "be": be, "m": m, "v": v, "eps": eps}
    return params, raw


def down0_1_ref(x, raw, neg_slope=NEG_SLOPE):
    """Plain-JAX reference matching PyTorch inference-mode semantics (NCHW)."""
    eps = raw["eps"]
    y = lax.conv_general_dilated(
        x, raw["w"], (1, 1), ((0, 0), (0, 0)),
        dimension_numbers=("NCHW", "OIHW", "NCHW"),
        precision=lax.Precision.HIGHEST)
    y = y + raw["b"][None, :, None, None]
    y = (raw["g"][None, :, None, None] *
         (y - raw["m"][None, :, None, None]) /
         jnp.sqrt(raw["v"] + eps)[None, :, None, None] +
         raw["be"][None, :, None, None])
    return jnp.where(y > 0, y, neg_slope * y)


if __name__ == "__main__":
    key = jax.random.PRNGKey(0)
    k_x, k_p = jax.random.split(key)

    N, in_ch, out_ch, H, W = 2, 4, 8, 16, 16
    x = jax.random.normal(k_x, (N, in_ch, H, W), jnp.float32)

    params, raw = make_params(k_p, in_ch, out_ch)

    out = jax.block_until_ready(down0_1_pallas(x, params))
    ref = jax.block_until_ready(down0_1_ref(x, raw))

    assert out.shape == (N, out_ch, H, W)
    assert jnp.allclose(out, ref, atol=1e-4, rtol=1e-4), "mismatch vs reference"

    print("KERNEL_OK")
</pallas_src>

<mosaic_0001>
module attributes {stable_mosaic.version = 11 : i64} {
  func.func @_conv1x1_bn_lrelu_kernel(%arg0: i32, %arg1: i32, %arg2: memref<2x4x256xf32, #tpu.memory_space<vmem>>, %arg3: memref<8x4xf32, #tpu.memory_space<vmem>>, %arg4: memref<8x1xf32, #tpu.memory_space<vmem>>, %arg5: memref<2x8x256xf32, #tpu.memory_space<vmem>>) attributes {dimension_semantics = [#tpu.dimension_semantics<parallel>, #tpu.dimension_semantics<parallel>], iteration_bounds = array<i64: 1, 1>, scalar_prefetch = 0 : i64, scratch_operands = 0 : i64, tpu.core_type = #tpu.core_type<tc>, window_params = [{transform_indices = @transform_0, window_bounds = array<i64: 2, 4, 256>}, {pipeline_mode = #tpu.pipeline_mode<synchronous>, transform_indices = @transform_1, window_bounds = array<i64: 8, 4>}, {pipeline_mode = #tpu.pipeline_mode<synchronous>, transform_indices = @transform_2, window_bounds = array<i64: 8, 1>}, {transform_indices = @transform_3, window_bounds = array<i64: 2, 8, 256>}]} {
    %c0 = arith.constant 0 : index
    %c0_0 = arith.constant 0 : index
    %0 = vector.load %arg3[%c0, %c0_0] : memref<8x4xf32, #tpu.memory_space<vmem>>, vector<8x4xf32>
    %c0_1 = arith.constant 0 : index
    %c0_2 = arith.constant 0 : index
    %1 = vector.load %arg4[%c0_1, %c0_2] : memref<8x1xf32, #tpu.memory_space<vmem>>, vector<8x1xf32>
    %2 = vector.shape_cast %1 : vector<8x1xf32> to vector<8x1xf32>
    %3 = vector.broadcast %2 : vector<8x1xf32> to vector<8x256xf32>
    %c0_3 = arith.constant 0 : index
    %c0_4 = arith.constant 0 : index
    %c0_5 = arith.constant 0 : index
    %4 = vector.load %arg2[%c0_3, %c0_4, %c0_5] : memref<2x4x256xf32, #tpu.memory_space<vmem>>, vector<1x4x256xf32>
    %5 = vector.shape_cast %4 : vector<1x4x256xf32> to vector<4x256xf32>
    %cst = arith.constant dense<0.000000e+00> : vector<8x256xf32>
    %6 = tpu.matmul %0, %5, %cst {dimension_numbers = #tpu.dot_dimension_numbers<[1], [0], [0], [1], [0, 0, 1, 1], [], []>} : vector<8x4xf32>, vector<4x256xf32>, vector<8x256xf32> -> vector<8x256xf32>
    %7 = arith.addf %6, %3 : vector<8x256xf32>
    %cst_6 = arith.constant 0.000000e+00 : f32
    %8 = vector.broadcast %cst_6 : f32 to vector<8x256xf32>
    %9 = arith.cmpf ogt, %7, %8 : vector<8x256xf32>
    %cst_7 = arith.constant 2.000000e-01 : f32
    %10 = vector.broadcast %cst_7 : f32 to vector<8x256xf32>
    %11 = arith.mulf %10, %7 : vector<8x256xf32>
    %12 = arith.select %9, %7, %11 : vector<8x256xi1>, vector<8x256xf32>
    %c0_8 = arith.constant 0 : index
    %c0_9 = arith.constant 0 : index
    %c0_10 = arith.constant 0 : index
    %13 = vector.load %arg5[%c0_8, %c0_9, %c0_10] : memref<2x8x256xf32, #tpu.memory_space<vmem>>, vector<1x8x256xf32>
    %14 = vector.shape_cast %13 : vector<1x8x256xf32> to vector<8x256xf32>
    %15 = vector.shape_cast %12 : vector<8x256xf32> to vector<1x8x256xf32>
    tpu.vector_store %arg5[%c0_8, %c0_9, %c0_10], %15 {strides = array<i32>} : memref<2x8x256xf32, #tpu.memory_space<vmem>>, vector<1x8x256xf32>,
    %c1 = arith.constant 1 : index
    %c0_11 = arith.constant 0 : index
    %c0_12 = arith.constant 0 : index
    %16 = vector.load %arg2[%c1, %c0_11, %c0_12] : memref<2x4x256xf32, #tpu.memory_space<vmem>>, vector<1x4x256xf32>
    %17 = vector.shape_cast %16 : vector<1x4x256xf32> to vector<4x256xf32>
    %cst_13 = arith.constant dense<0.000000e+00> : vector<8x256xf32>
    %18 = tpu.matmul %0, %17, %cst_13 {dimension_numbers = #tpu.dot_dimension_numbers<[1], [0], [0], [1], [0, 0, 1, 1], [], []>} : vector<8x4xf32>, vector<4x256xf32>, vector<8x256xf32> -> vector<8x256xf32>
    %19 = arith.addf %18, %3 : vector<8x256xf32>
    %cst_14 = arith.constant 0.000000e+00 : f32
    %20 = vector.broadcast %cst_14 : f32 to vector<8x256xf32>
    %21 = arith.cmpf ogt, %19, %20 : vector<8x256xf32>
    %cst_15 = arith.constant 2.000000e-01 : f32
    %22 = vector.broadcast %cst_15 : f32 to vector<8x256xf32>
    %23 = arith.mulf %22, %19 : vector<8x256xf32>
    %24 = arith.select %21, %19, %23 : vector<8x256xi1>, vector<8x256xf32>
    %c1_16 = arith.constant 1 : index
    %c0_17 = arith.constant 0 : index
    %c0_18 = arith.constant 0 : index
    %25 = vector.load %arg5[%c1_16, %c0_17, %c0_18] : memref<2x8x256xf32, #tpu.memory_space<vmem>>, vector<1x8x256xf32>
    %26 = vector.shape_cast %25 : vector<1x8x256xf32> to vector<8x256xf32>
    %27 = vector.shape_cast %24 : vector<8x256xf32> to vector<1x8x256xf32>
    tpu.vector_store %arg5[%c1_16, %c0_17, %c0_18], %27 {strides = array<i32>} : memref<2x8x256xf32, #tpu.memory_space<vmem>>, vector<1x8x256xf32>,
    return
  }
  func.func @transform_0(%arg0: i32, %arg1: i32) -> (i32, i32, i32) {
    %c0_i32 = arith.constant 0 : i32
    %c0_i32_0 = arith.constant 0 : i32
    return %arg0, %c0_i32, %arg1 : i32, i32, i32
  }
  func.func @transform_1(%arg0: i32, %arg1: i32) -> (i32, i32) {
    %c0_i32 = arith.constant 0 : i32
    %c0_i32_0 = arith.constant 0 : i32
    %c0_i32_1 = arith.constant 0 : i32
    return %c0_i32, %c0_i32_0 : i32, i32
  }
  func.func @transform_2(%arg0: i32, %arg1: i32) -> (i32, i32) {
    %c0_i32 = arith.constant 0 : i32
    %c0_i32_0 = arith.constant 0 : i32
    %c0_i32_1 = arith.constant 0 : i32
    return %c0_i32, %c0_i32_0 : i32, i32
  }
  func.func @transform_3(%arg0: i32, %arg1: i32) -> (i32, i32, i32) {
    %c0_i32 = arith.constant 0 : i32
    %c0_i32_0 = arith.constant 0 : i32
    return %arg0, %c0_i32, %arg1 : i32, i32, i32
  }
}

</mosaic_0001>

<bundles_post_ra>
// kernel: tpu_custom_call.1
= control target key start
LH: loop header
LB: loop body
LE: loop exit
PB: predicated region body
PF: predicated region fallthrough
CT: control target
= control target key end

     0   :  { %vm29_vm0 = vcmask 1043456   ;;  %v256_v4 = vmov 0.0   ;;  %s309_s0 = inlined_call_operand.vmem [shape: f32[2,4,256], index: 0, kind: input, shape index: {}]   ;;  %s310_s1 = inlined_call_operand.vmem [shape: f32[8,4], index: 1, kind: input, shape index: {}]   ;;  %s311_s2 = inlined_call_operand.vmem [shape: f32[8,1], index: 2, kind: input, shape index: {}]   ;;  %s312_s3 = inlined_call_operand.hbm [shape: f32[2,8,256], index: 3, kind: output, shape index: {}]  }
   0x1   :  { %v22_v0 = vld [vmem:[%s309_s0] sm:$0xff]  ;;  %v220_v1 = vld [vmem:[%s309_s0 + $0x8] sm:$0xff]  ;;  %98 = vmatprep.mubr.f32.mxu0 %v256_v4  ;;  %185 = vmatprep.mubr.f32.mxu1 %v256_v4 }
   0x2   :  { %v24_v2 = vcombine.high %v22_v0, %v22_v0  ;;  %v116_v3 = vcombine.high %v220_v1, %v220_v1 }
   0x3   :  { %8 = vsyncpa [#allocation3], 0  ;;  %v15_v5 = vld [vmem:[%s310_s1] sm:$0xff]  ;;  %vm25_vm1 = vcmask 31744   ;;  %v257_v6 = vmov 0   ;;  %s258_s0 = smov [#allocation2]  }
   0x4   :  { %229 = vset.pattern.permute.xlu0 %v257_v6  ;;  %217 = vmatprep.subr.msk.mxu0 %vm29_vm0, %v24_v2  ;;  %v16_v7 = vld [vmem:[%s311_s2] sm:$0xff]  ;;  %s206_s1 = sshll.u32 %s258_s0, 4  ;;  %s207_s1 = int_to_ptr.vmem [resolvable:$true] %s206_s1 }
   0x5   :  { %221 = vmatprep.subr.msk.mxu1 %vm29_vm0, %v116_v3  ;;  %218 = vmatpush1.msk.msra.mxu0 %vm29_vm0, %v22_v0  ;;  %s232_s2 = scalar_lea.vmem %s207_s1, 512  ;;  %p237_p1 = scmp.lt.s32.totalorder %s207_s1, %s207_s1 }
   0x6   :  { %222 = vmatpush1.msk.msra.mxu1 %vm29_vm0, %v220_v1  ;;  %219 = vmatmul.mubr.msk.f32.vlgmr.msra.gmra.mrb[0].mxu0 %vm25_vm1, %v15_v5  ;;  %p233_p0 = scmp.ne.s32.totalorder %s207_s1, %s232_s2  ;;  %p238_p2 = scmp.lt.s32.totalorder %s232_s2, %s232_s2 }
   0x7   :  { %223 = vmatmul.mubr.msk.f32.vlgmr.msra.gmra.mrb[0].mxu1 %vm25_vm1, %v15_v5  ;;  %19 = vperm.xlu0 %229, %v16_v7  }
   0x8   :  { %p239_p3 = por %p238_p2, %p237_p1 }
   0xa   :  { %p240_p4 = pnand %p239_p3, %p233_p0 }
  0x86   :  { %v20_v8 = vpop.permute.xlu0 %19 }
  0xd9   :  { %v100_v9 = vpop.f32.mrb[0].mxu0 }
  0xda   :  { %v187_v10 = vpop.f32.mrb[0].mxu1  ;;  %v101_v11 = vadd.f32 %v100_v9, %v20_v8  ;;  %v102_v13 = vpop.f32.mrb[1].mxu0 }
  0xdb   :  { %v188_v12 = vadd.f32 %v187_v10, %v20_v8  ;;  %v189_v14 = vpop.f32.mrb[1].mxu1  ;;  %v103_v15 = vadd.f32 %v102_v13, %v20_v8 }
  0xdc   :  { %v190_v16 = vadd.f32 %v189_v14, %v20_v8  ;;  %vm105_vm2 = vcmp.gt.f32.partialorder %v101_v11, 0.0  ;;  %v107_v17 = vmul.f32 0.2, %v101_v11 }
  0xdd   :  { %vm192_vm3 = vcmp.gt.f32.partialorder %v188_v12, 0.0  ;;  %v194_v18 = vmul.f32 0.2, %v188_v12  ;;  %vm106_vm4 = vcmp.gt.f32.partialorder %v103_v15, 0.0  ;;  %v108_v19 = vmul.f32 0.2, %v103_v15 }
  0xde   :  { %vm193_vm5 = vcmp.gt.f32.partialorder %v190_v16, 0.0  ;;  %v195_v20 = vmul.f32 0.2, %v190_v16  ;;  %v109_v21 = vsel %vm105_vm2, %v101_v11, %v107_v17 }
  0xdf   :  { %v196_v22 = vsel %vm192_vm3, %v188_v12, %v194_v18  ;;  %111 = vst [vmem:[#allocation2] sm:$0xff] %v109_v21  ;;  %v110_v23 = vsel %vm106_vm4, %v103_v15, %v108_v19 }
  0xe0   :  { %199 = vst [vmem:[#allocation2 + $0x10] sm:$0xff] %v196_v22  ;;  %v197_v24 = vsel %vm193_vm5, %v190_v16, %v195_v20  ;;  %112 = vst [vmem:[#allocation2 + $0x8] sm:$0xff] %v110_v23 }
  0xe1   :  { %200 = vst [vmem:[#allocation2 + $0x18] sm:$0xff] %v197_v24 }
  0xe2   :  { %243 = shalt.err (!%p240_p4)
}
  0xe3   :  { %s244_s22 = scalar_lea.hbm %s312_s3, 512 }
  0xe4   :  { %p245_p5 = scmp.ne.s32.totalorder %s312_s3, %s244_s22  ;;  %p248_p6 = scmp.lt.u32.totalorder %s244_s22, %s312_s3 }
  0xe6   :  { %p250_p7 = pnand %p248_p6, %p245_p5 }
  0xe8   :  { %253 = shalt.err (!%p250_p7)
}
  0xe9   :  { %s259_s27 = smov 256   ;;  %s260_s28 = smov 16  }
  0xea   :  { %212 = dma.vmem_to_hbm [thread:$0]  %s207_s1, 512, %s312_s3, [#allocation3], %s259_s27, %s259_s27, %s260_s28  }
  0xeb   :  { %254 = dma.done.wait [#allocation3], 512  }
  0xec   :  { %255 = vsyncadd [#allocation3], 4294966784 }
  0xed   :  { %216 = vsyncpa [#allocation3], 1 }

</bundles_post_ra>
